<compile_context>
chip_gen: v6e
topology: v6e:2x2x1
jax: 0.10.0
libtpu: 0.0.40
codegen_flags: <defaults>
</compile_context>

<pallas_src>
import math
import functools

import jax
import jax.numpy as jnp
from jax import lax
from jax.experimental import pallas as pl
from jax.experimental.pallas import tpu as pltpu

_MB = 1024 * 1024


# ---------------------------------------------------------------------------
# Capability probe (constructor only -- not a try/except around pallas_call)
# ---------------------------------------------------------------------------

def _probe_single_buffer_weights():
    if not hasattr(pl, "Buffered"):
        return False
    try:
        pl.BlockSpec((8, 128), lambda i: (0, 0), pipeline_mode=pl.Buffered(1))
        return True
    except TypeError:
        return False


_WEIGHT_SINGLE_BUFFER = _probe_single_buffer_weights()


# ---------------------------------------------------------------------------
# Generation-aware VMEM budgeting / query tiling
# ---------------------------------------------------------------------------

def _vmem_limit_bytes():
    """Pick a scoped-VMEM limit from the chip's physical VMEM (v7x=64MiB,
    v5e/v6e=128MiB); leave ~25% headroom for the compiler."""
    cap = None
    if hasattr(pltpu, "get_tpu_info"):
        try:
            cap = getattr(pltpu.get_tpu_info(), "vmem_capacity_bytes", None)
        except Exception:  # hardware query only; never guards the kernel itself
            cap = None
    if cap is None:
        cap = 64 * _MB  # conservative default: assume v7x-sized VMEM
    return min((cap * 3) // 4, 100 * _MB)


def _estimate_vmem_bytes(S, H, TQ, x_bytes, dense_mask, single_buffer_weights):
    """Rough per-TensorCore VMEM footprint for one query-tile step (bytes)."""
    wbuf = 1 if single_buffer_weights else 2
    weights = wbuf * (3 * H * H * 2 + 6 * H * 4)           # bf16 matrices + f32 vectors
    x_in = 2 * S * H * x_bytes                             # double-buffered full-seq x
    kv_scr = 2 * S * H * 2                                 # bf16 K/V scratch
    mask = 2 * (TQ if dense_mask else 1) * S * 2           # double-buffered bf16 mask
    out = 2 * TQ * H * x_bytes                             # double-buffered output tile
    live = 2 * TQ * S * 4 + 2 * S * H * 4                  # f32 scores/probs + transient f32 k,v
    return weights + x_in + kv_scr + mask + out + live


def _choose_q_tile(S, target):
    """Largest divisor of S that is <= target, preferring 256/128/8 alignment
    (MXU-friendly on v6e/v7x; sublane-aligned otherwise).  Forcing TQ | S means
    no padded rows ever reach softmax / LayerNorm."""
    if S <= target:
        return S
    for align in (256, 128, 8):
        best = 0
        t = align
        while t <= target:
            if S % t == 0:
                best = t
            t += align
        if best:
            return best
    return S  # no aligned divisor -> single full-sequence tile


# ---------------------------------------------------------------------------
# Kernel body
# ---------------------------------------------------------------------------

def _synthesis_kernel(x_ref, mask_ref, wq_ref, bq_ref, wv_ref, bv_ref,
                      wd_ref, bd_ref, g_ref, b_ref, o_ref, k_scr, v_scr,
                      *, q_tile, eps, qk_scale):
    mm = wq_ref.dtype
    qi = pl.program_id(1)

    # ---- K/V projection: once per batch, cached in bf16 VMEM scratch -------
    @pl.when(qi == 0)
    def _project():
        xs = x_ref[0].astype(mm)                                      # (S, H)
        k = jnp.dot(xs, wq_ref[...], preferred_element_type=jnp.float32) + bq_ref[...]
        v = jnp.dot(xs, wv_ref[...], preferred_element_type=jnp.float32) + bv_ref[...]
        # Fold the 1/sqrt(H) score scale into K as H**-0.25: q and k are both
        # read from this buffer, so q @ k^T carries the full 1/sqrt(H).
        k_scr[...] = (k * qk_scale).astype(mm)
        v_scr[...] = v.astype(mm)

    # ---- attention for this query tile (q == k: slice the cached K) --------
    start = pl.multiple_of(qi * q_tile, q_tile)
    q = k_scr[pl.ds(start, q_tile), :]                                # (TQ, H) bf16

    # scores = q @ k^T: contract the hidden dim directly (no transpose copy).
    scores = lax.dot_general(q, k_scr[...],
                             dimension_numbers=(((1,), (1,)), ((), ())),
                             preferred_element_type=jnp.float32)      # (TQ, S)
    scores = scores + mask_ref[0].astype(jnp.float32)                 # (TQ,S) or (1,S)

    # Numerically stable softmax in f32; approx reciprocal rides the EUP slot.
    scores = scores - jnp.max(scores, axis=-1, keepdims=True)
    p = jnp.exp(scores)
    p = p * pl.reciprocal(jnp.sum(p, axis=-1, keepdims=True), approx=True)

    ctx = jnp.dot(p.astype(mm), v_scr[...],
                  preferred_element_type=jnp.float32)                 # (TQ, H)
    h = jnp.dot(ctx.astype(mm), wd_ref[...],
                preferred_element_type=jnp.float32) + bd_ref[...]     # (TQ, H)
    # Residual: row-slice of the already-resident full-sequence x block.
    h = h + x_ref[0, pl.ds(start, q_tile), :].astype(jnp.float32)

    # LayerNorm (TF style: eps inside the sqrt), f32; rsqrt goes to the EUP.
    u = jnp.mean(h, axis=-1, keepdims=True)
    d = h - u
    s = jnp.mean(d * d, axis=-1, keepdims=True)
    out = g_ref[...] * (d * lax.rsqrt(s + eps)) + b_ref[...]

    o_ref[0] = out.astype(o_ref.dtype)


# ---------------------------------------------------------------------------
# Wrapper
# ---------------------------------------------------------------------------

def synthesis_v11(x, attention_mask, params, *, eps=1e-12, q_tile=None,
                  matmul_dtype=jnp.bfloat16, mask_dtype=jnp.bfloat16):
    """x: (B, S, H).  attention_mask: (B, 1, S, S) dense or (B, 1, 1, S) row mask."""
    B, S, H = x.shape
    x_bytes = jnp.dtype(x.dtype).itemsize

    am = attention_mask
    if am.ndim != 4 or am.shape[1] != 1:
        raise ValueError("attention_mask must be (B, 1, S, S) or (B, 1, 1, S)")
    dense_mask = am.shape[2] != 1

    # --- VMEM budget & query tiling (generation-aware) ----------------------
    vmem_limit = _vmem_limit_bytes()
    if q_tile is None:
        q_tile = 1024 if vmem_limit >= 96 * _MB else 512
    target = q_tile
    # Shrink the tile target until the rough footprint fits; if even a small
    # tile can't fit (huge S*H), proceed and let the compiler schedule/spill.
    while target > 64 and _estimate_vmem_bytes(
            S, H, min(target, S), x_bytes, dense_mask,
            _WEIGHT_SINGLE_BUFFER) > int(vmem_limit * 0.85):
        target //= 2
    TQ = _choose_q_tile(S, target)
    NQ = S // TQ

    # --- mask: row mask avoids DMAing a dense S x S mask; ship as bf16 ------
    # (additive masks are 0 / large-negative; bf16 is more than enough there).
    if dense_mask:
        mask = am.reshape(B, S, S).astype(mask_dtype)        # == .squeeze(1)
        mask_block = (1, TQ, S)
        mask_index = lambda b, qi: (b, qi, 0)
    else:
        mask = am.reshape(B, 1, S).astype(mask_dtype)        # broadcast over query rows
        mask_block = (1, 1, S)
        mask_index = lambda b, qi: (b, 0, 0)

    # --- weight prep: transpose to (in, out); matrices bf16, vectors f32 ----
    wq = params["wq"].T.astype(matmul_dtype)
    bq = params["bq"].reshape(1, H).astype(jnp.float32)
    wv = params["wv"].T.astype(matmul_dtype)
    bv = params["bv"].reshape(1, H).astype(jnp.float32)
    wd = params["wd"].T.astype(matmul_dtype)
    bd = params["bd"].reshape(1, H).astype(jnp.float32)
    gamma = params["ln_weight"].reshape(1, H).astype(jnp.float32)
    beta = params["ln_bias"].reshape(1, H).astype(jnp.float32)

    def _const_spec(shape):
        ndim = len(shape)

        def idx(b, qi):
            return (0,) * ndim

        if _WEIGHT_SINGLE_BUFFER:
            # Constant-index weight blocks: a second pipeline buffer is pure
            # VMEM waste (matters most under v7x's 64 MiB per-core VMEM).
            return pl.BlockSpec(shape, idx, pipeline_mode=pl.Buffered(1))
        return pl.BlockSpec(shape, idx)

    in_specs = [
        # Full-sequence x: block index depends only on b -> DMA'd once per batch,
        # resident across all query tiles of that batch.
        pl.BlockSpec((1, S, H), lambda b, qi: (b, 0, 0)),
        pl.BlockSpec(mask_block, mask_index),
        _const_spec((H, H)), _const_spec((1, H)),   # wq, bq
        _const_spec((H, H)), _const_spec((1, H)),   # wv, bv
        _const_spec((H, H)), _const_spec((1, H)),   # wd, bd
        _const_spec((1, H)), _const_spec((1, H)),   # gamma, beta
    ]
    out_specs = pl.BlockSpec((1, TQ, H), lambda b, qi: (b, qi, 0))
    scratch_shapes = [
        pltpu.VMEM((S, H), matmul_dtype),   # cached K (already scaled by H**-0.25)
        pltpu.VMEM((S, H), matmul_dtype),   # cached V
    ]

    kernel = functools.partial(_synthesis_kernel, q_tile=TQ, eps=eps,
                               qk_scale=float(H) ** -0.25)

    call = pl.pallas_call(
        kernel,
        out_shape=jax.ShapeDtypeStruct((B, S, H), x.dtype),
        grid_spec=pltpu.PrefetchScalarGridSpec(
            num_scalar_prefetch=0,
            grid=(B, NQ),
            in_specs=in_specs,
            out_specs=out_specs,
            scratch_shapes=scratch_shapes),
        compiler_params=pltpu.CompilerParams(
            # batch: parallel (megacore); query tiles: arbitrary (sequential)
            # because the K/V scratch is written at qi == 0 and reused after.
            dimension_semantics=("parallel", "arbitrary"),
            vmem_limit_bytes=vmem_limit),
    )
    return call(x, mask, wq, bq, wv, bv, wd, bd, gamma, beta)


# ---------------------------------------------------------------------------
# Pure-JAX reference (matches the PyTorch forward in eval mode)
# ---------------------------------------------------------------------------

def synthesis_v11_ref(x, attention_mask, params, *, eps=1e-12,
                      matmul_dtype=jnp.float32):
    H = x.shape[-1]
    c = lambda a: a.astype(matmul_dtype)
    f32 = jnp.float32
    q = jnp.dot(c(x), c(params["wq"].T), preferred_element_type=f32) + params["bq"]
    v = jnp.dot(c(x), c(params["wv"].T), preferred_element_type=f32) + params["bv"]
    k = q                                                          # q == k
    scores = jnp.einsum("bqh,bkh->bqk", c(q), c(k),
                        preferred_element_type=f32) / math.sqrt(H)
    mask = attention_mask
    if mask.ndim == 4:
        mask = jnp.squeeze(mask, 1)
    scores = scores + mask
    p = jax.nn.softmax(scores, axis=-1)
    ctx = jnp.einsum("bqk,bkh->bqh", c(p), c(v), preferred_element_type=f32)
    h = jnp.dot(c(ctx), c(params["wd"].T), preferred_element_type=f32) + params["bd"]
    h = h + x
    u = jnp.mean(h, -1, keepdims=True)
    s = jnp.mean((h - u) ** 2, -1, keepdims=True)
    hn = (h - u) / jnp.sqrt(s + eps)
    return params["ln_weight"] * hn + params["ln_bias"]


def init_params(key, hidden_size):
    ks = jax.random.split(key, 6)
    bound = 1.0 / math.sqrt(hidden_size)  # nn.Linear default init range
    uni = lambda k, shape: jax.random.uniform(
        k, shape, jnp.float32, minval=-bound, maxval=bound)
    return {
        "wq": uni(ks[0], (hidden_size, hidden_size)),  # (out, in)
        "bq": uni(ks[1], (hidden_size,)),
        "wv": uni(ks[2], (hidden_size, hidden_size)),
        "bv": uni(ks[3], (hidden_size,)),
        "wd": uni(ks[4], (hidden_size, hidden_size)),
        "bd": uni(ks[5], (hidden_size,)),
        "ln_weight": jnp.ones((hidden_size,), jnp.float32),
        "ln_bias": jnp.zeros((hidden_size,), jnp.float32),
    }


if __name__ == "__main__":
    key = jax.random.PRNGKey(0)
    k_x, k_m, k_p, k_x2, k_m2 = jax.random.split(key, 5)

    # --- test 1: row (key-padding) mask, single query tile -------------------
    B, S, H = 2, 8, 32
    x = jax.random.normal(k_x, (B, S, H), jnp.float32)
    mask_bits = jax.random.bernoulli(k_m, p=0.8, shape=(B, 1, 1, S))
    attention_mask = jnp.where(mask_bits, 0.0, -10000.0).astype(jnp.float32)
    params = init_params(k_p, H)

    out = jax.block_until_ready(synthesis_v11(x, attention_mask, params))
    assert out.shape == (B, S, H)

    ref_bf16 = synthesis_v11_ref(x, attention_mask, params, matmul_dtype=jnp.bfloat16)
    ref_f32 = synthesis_v11_ref(x, attention_mask, params)
    assert jnp.allclose(out, ref_bf16, atol=2e-2, rtol=2e-2), "mismatch vs bf16 reference"
    assert jnp.allclose(out, ref_f32, atol=5e-2, rtol=5e-2), "mismatch vs f32 reference"

    # Dense (B,1,S,S) mask path (full module interface) must match too.
    dense_mask = jnp.broadcast_to(attention_mask, (B, 1, S, S))
    out_dense = jax.block_until_ready(synthesis_v11(x, dense_mask, params))
    assert jnp.allclose(out_dense, ref_bf16, atol=2e-2, rtol=2e-2), "dense-mask mismatch"

    # --- test 2: exercise the query-tiled path (S=16, TQ=8 -> 2 tiles) -------
    B2, S2 = 2, 16
    x2 = jax.random.normal(k_x2, (B2, S2, H), jnp.float32)
    mask_bits2 = jax.random.bernoulli(k_m2, p=0.8, shape=(B2, 1, 1, S2))
    am2 = jnp.where(mask_bits2, 0.0, -10000.0).astype(jnp.float32)
    am2_dense = jnp.broadcast_to(am2, (B2, 1, S2, S2))

    out2 = jax.block_until_ready(synthesis_v11(x2, am2_dense, params, q_tile=8))
    ref2 = synthesis_v11_ref(x2, am2_dense, params, matmul_dtype=jnp.bfloat16)
    assert jnp.allclose(out2, ref2, atol=2e-2, rtol=2e-2), "tiled-path mismatch"

    print("KERNEL_OK")
</pallas_src>

<mosaic_0001>
module attributes {stable_mosaic.version = 11 : i64} {
  func.func @_synthesis_kernel(%arg0: i32, %arg1: i32, %arg2: memref<1x8x32xf32, #tpu.memory_space<vmem>>, %arg3: memref<1x1x8xbf16, #tpu.memory_space<vmem>>, %arg4: memref<32x32xbf16, #tpu.memory_space<vmem>>, %arg5: memref<1x32xf32, #tpu.memory_space<vmem>>, %arg6: memref<32x32xbf16, #tpu.memory_space<vmem>>, %arg7: memref<1x32xf32, #tpu.memory_space<vmem>>, %arg8: memref<32x32xbf16, #tpu.memory_space<vmem>>, %arg9: memref<1x32xf32, #tpu.memory_space<vmem>>, %arg10: memref<1x32xf32, #tpu.memory_space<vmem>>, %arg11: memref<1x32xf32, #tpu.memory_space<vmem>>, %arg12: memref<1x8x32xf32, #tpu.memory_space<vmem>>, %arg13: memref<8x32xbf16, #tpu.memory_space<vmem>>, %arg14: memref<8x32xbf16, #tpu.memory_space<vmem>>) attributes {dimension_semantics = [#tpu.dimension_semantics<parallel>, #tpu.dimension_semantics<arbitrary>], iteration_bounds = array<i64: 2, 1>, scalar_prefetch = 0 : i64, scratch_operands = 2 : i64, tpu.core_type = #tpu.core_type<tc>, window_params = [{transform_indices = @transform_0, window_bounds = array<i64: 1, 8, 32>}, {transform_indices = @transform_1, window_bounds = array<i64: 1, 1, 8>}, {pipeline_mode = #tpu.pipeline_mode<synchronous>, transform_indices = @transform_2, window_bounds = array<i64: 32, 32>}, {pipeline_mode = #tpu.pipeline_mode<synchronous>, transform_indices = @transform_3, window_bounds = array<i64: 1, 32>}, {pipeline_mode = #tpu.pipeline_mode<synchronous>, transform_indices = @transform_4, window_bounds = array<i64: 32, 32>}, {pipeline_mode = #tpu.pipeline_mode<synchronous>, transform_indices = @transform_5, window_bounds = array<i64: 1, 32>}, {pipeline_mode = #tpu.pipeline_mode<synchronous>, transform_indices = @transform_6, window_bounds = array<i64: 32, 32>}, {pipeline_mode = #tpu.pipeline_mode<synchronous>, transform_indices = @transform_7, window_bounds = array<i64: 1, 32>}, {pipeline_mode = #tpu.pipeline_mode<synchronous>, transform_indices = @transform_8, window_bounds = array<i64: 1, 32>}, {pipeline_mode = #tpu.pipeline_mode<synchronous>, transform_indices = @transform_9, window_bounds = array<i64: 1, 32>}, {transform_indices = @transform_10, window_bounds = array<i64: 1, 8, 32>}]} {
    %c0_i32 = arith.constant 0 : i32
    %0 = arith.cmpi eq, %arg1, %c0_i32 : i32
    %1 = arith.extui %0 : i1 to i32
    %c0_i32_0 = arith.constant 0 : i32
    %2 = arith.cmpi ne, %1, %c0_i32_0 : i32
    scf.if %2 {
      %c0_30 = arith.constant 0 : index
      %c0_31 = arith.constant 0 : index
      %c0_32 = arith.constant 0 : index
      %62 = vector.load %arg2[%c0_30, %c0_31, %c0_32] : memref<1x8x32xf32, #tpu.memory_space<vmem>>, vector<1x8x32xf32>
      %63 = vector.shape_cast %62 : vector<1x8x32xf32> to vector<8x32xf32>
      %64 = arith.truncf %63 : vector<8x32xf32> to vector<8x32xbf16>
      %c0_33 = arith.constant 0 : index
      %c0_34 = arith.constant 0 : index
      %65 = vector.load %arg4[%c0_33, %c0_34] : memref<32x32xbf16, #tpu.memory_space<vmem>>, vector<32x32xbf16>
      %cst_35 = arith.constant dense<0.000000e+00> : vector<8x32xf32>
      %66 = tpu.matmul %64, %65, %cst_35 {dimension_numbers = #tpu.dot_dimension_numbers<[1], [0], [0], [1], [0, 0, 1, 1], [], []>} : vector<8x32xbf16>, vector<32x32xbf16>, vector<8x32xf32> -> vector<8x32xf32>
      %c0_36 = arith.constant 0 : index
      %c0_37 = arith.constant 0 : index
      %67 = vector.load %arg5[%c0_36, %c0_37] : memref<1x32xf32, #tpu.memory_space<vmem>>, vector<1x32xf32>
      %68 = vector.broadcast %67 : vector<1x32xf32> to vector<8x32xf32>
      %69 = arith.addf %66, %68 : vector<8x32xf32>
      %c0_38 = arith.constant 0 : index
      %c0_39 = arith.constant 0 : index
      %70 = vector.load %arg6[%c0_38, %c0_39] : memref<32x32xbf16, #tpu.memory_space<vmem>>, vector<32x32xbf16>
      %cst_40 = arith.constant dense<0.000000e+00> : vector<8x32xf32>
      %71 = tpu.matmul %64, %70, %cst_40 {dimension_numbers = #tpu.dot_dimension_numbers<[1], [0], [0], [1], [0, 0, 1, 1], [], []>} : vector<8x32xbf16>, vector<32x32xbf16>, vector<8x32xf32> -> vector<8x32xf32>
      %c0_41 = arith.constant 0 : index
      %c0_42 = arith.constant 0 : index
      %72 = vector.load %arg7[%c0_41, %c0_42] : memref<1x32xf32, #tpu.memory_space<vmem>>, vector<1x32xf32>
      %73 = vector.broadcast %72 : vector<1x32xf32> to vector<8x32xf32>
      %74 = arith.addf %71, %73 : vector<8x32xf32>
      %cst_43 = arith.constant 0.420448214 : f32
      %75 = vector.broadcast %cst_43 : f32 to vector<8x32xf32>
      %76 = arith.mulf %69, %75 : vector<8x32xf32>
      %77 = arith.truncf %76 : vector<8x32xf32> to vector<8x32xbf16>
      %c0_44 = arith.constant 0 : index
      %c0_45 = arith.constant 0 : index
      %78 = vector.load %arg13[%c0_44, %c0_45] : memref<8x32xbf16, #tpu.memory_space<vmem>>, vector<8x32xbf16>
      tpu.vector_store %arg13[%c0_44, %c0_45], %77 {strides = array<i32>} : memref<8x32xbf16, #tpu.memory_space<vmem>>, vector<8x32xbf16>,
      %79 = arith.truncf %74 : vector<8x32xf32> to vector<8x32xbf16>
      %c0_46 = arith.constant 0 : index
      %c0_47 = arith.constant 0 : index
      %80 = vector.load %arg14[%c0_46, %c0_47] : memref<8x32xbf16, #tpu.memory_space<vmem>>, vector<8x32xbf16>
      tpu.vector_store %arg14[%c0_46, %c0_47], %79 {strides = array<i32>} : memref<8x32xbf16, #tpu.memory_space<vmem>>, vector<8x32xbf16>,
    } else {
    }
    %c8_i32 = arith.constant 8 : i32
    %3 = arith.muli %arg1, %c8_i32 : i32
    %4 = tpu.assume_multiple %3, 8 : i32
    %5 = arith.index_cast %4 : i32 to index
    %c0 = arith.constant 0 : index
    %6 = vector.load %arg13[%5, %c0] : memref<8x32xbf16, #tpu.memory_space<vmem>>, vector<8x32xbf16>
    %c0_1 = arith.constant 0 : index
    %c0_2 = arith.constant 0 : index
    %7 = vector.load %arg13[%c0_1, %c0_2] : memref<8x32xbf16, #tpu.memory_space<vmem>>, vector<8x32xbf16>
    %cst = arith.constant dense<0.000000e+00> : vector<8x8xf32>
    %8 = tpu.matmul %6, %7, %cst {dimension_numbers = #tpu.dot_dimension_numbers<[1], [1], [0], [0], [0, 0, 1, 0], [], []>} : vector<8x32xbf16>, vector<8x32xbf16>, vector<8x8xf32> -> vector<8x8xf32>
    %c0_3 = arith.constant 0 : index
    %c0_4 = arith.constant 0 : index
    %c0_5 = arith.constant 0 : index
    %9 = vector.load %arg3[%c0_3, %c0_4, %c0_5] : memref<1x1x8xbf16, #tpu.memory_space<vmem>>, vector<1x1x8xbf16>
    %10 = vector.shape_cast %9 : vector<1x1x8xbf16> to vector<1x8xbf16>
    %11 = arith.extf %10 : vector<1x8xbf16> to vector<1x8xf32>
    %12 = vector.broadcast %11 : vector<1x8xf32> to vector<8x8xf32>
    %13 = arith.addf %8, %12 : vector<8x8xf32>
    %cst_6 = arith.constant dense<0xFF800000> : vector<8xf32>
    %14 = vector.multi_reduction <maximumf>, %13, %cst_6 [1] : vector<8x8xf32> to vector<8xf32>
    %15 = vector.shape_cast %14 : vector<8xf32> to vector<8x1xf32>
    %16 = vector.broadcast %15 : vector<8x1xf32> to vector<8x8xf32>
    %17 = arith.subf %13, %16 : vector<8x8xf32>
    %18 = math.exp %17 : vector<8x8xf32>
    %cst_7 = arith.constant dense<0.000000e+00> : vector<8xf32>
    %19 = vector.multi_reduction <add>, %18, %cst_7 [1] : vector<8x8xf32> to vector<8xf32>
    %20 = vector.shape_cast %19 : vector<8xf32> to vector<8x1xf32>
    %21 = tpu.reciprocal %20 {approx = true} : vector<8x1xf32> -> vector<8x1xf32>
    %22 = vector.broadcast %21 : vector<8x1xf32> to vector<8x8xf32>
    %23 = arith.mulf %18, %22 : vector<8x8xf32>
    %24 = arith.truncf %23 : vector<8x8xf32> to vector<8x8xbf16>
    %c0_8 = arith.constant 0 : index
    %c0_9 = arith.constant 0 : index
    %25 = vector.load %arg14[%c0_8, %c0_9] : memref<8x32xbf16, #tpu.memory_space<vmem>>, vector<8x32xbf16>
    %cst_10 = arith.constant dense<0.000000e+00> : vector<8x32xf32>
    %26 = tpu.matmul %24, %25, %cst_10 {dimension_numbers = #tpu.dot_dimension_numbers<[1], [0], [0], [1], [0, 0, 1, 1], [], []>} : vector<8x8xbf16>, vector<8x32xbf16>, vector<8x32xf32> -> vector<8x32xf32>
    %27 = arith.truncf %26 : vector<8x32xf32> to vector<8x32xbf16>
    %c0_11 = arith.constant 0 : index
    %c0_12 = arith.constant 0 : index
    %28 = vector.load %arg8[%c0_11, %c0_12] : memref<32x32xbf16, #tpu.memory_space<vmem>>, vector<32x32xbf16>
    %cst_13 = arith.constant dense<0.000000e+00> : vector<8x32xf32>
    %29 = tpu.matmul %27, %28, %cst_13 {dimension_numbers = #tpu.dot_dimension_numbers<[1], [0], [0], [1], [0, 0, 1, 1], [], []>} : vector<8x32xbf16>, vector<32x32xbf16>, vector<8x32xf32> -> vector<8x32xf32>
    %c0_14 = arith.constant 0 : index
    %c0_15 = arith.constant 0 : index
    %30 = vector.load %arg9[%c0_14, %c0_15] : memref<1x32xf32, #tpu.memory_space<vmem>>, vector<1x32xf32>
    %31 = vector.broadcast %30 : vector<1x32xf32> to vector<8x32xf32>
    %32 = arith.addf %29, %31 : vector<8x32xf32>
    %c0_16 = arith.constant 0 : index
    %33 = arith.index_cast %4 : i32 to index
    %c0_17 = arith.constant 0 : index
    %34 = vector.load %arg2[%c0_16, %33, %c0_17] : memref<1x8x32xf32, #tpu.memory_space<vmem>>, vector<1x8x32xf32>
    %35 = vector.shape_cast %34 : vector<1x8x32xf32> to vector<8x32xf32>
    %36 = arith.addf %32, %35 : vector<8x32xf32>
    %cst_18 = arith.constant dense<0.000000e+00> : vector<8xf32>
    %37 = vector.multi_reduction <add>, %36, %cst_18 [1] : vector<8x32xf32> to vector<8xf32>
    %38 = vector.shape_cast %37 : vector<8xf32> to vector<8x1xf32>
    %cst_19 = arith.constant 3.200000e+01 : f32
    %39 = vector.broadcast %cst_19 : f32 to vector<8x1xf32>
    %40 = arith.divf %38, %39 : vector<8x1xf32>
    %41 = vector.broadcast %40 : vector<8x1xf32> to vector<8x32xf32>
    %42 = arith.subf %36, %41 : vector<8x32xf32>
    %43 = arith.mulf %42, %42 : vector<8x32xf32>
    %cst_20 = arith.constant dense<0.000000e+00> : vector<8xf32>
    %44 = vector.multi_reduction <add>, %43, %cst_20 [1] : vector<8x32xf32> to vector<8xf32>
    %45 = vector.shape_cast %44 : vector<8xf32> to vector<8x1xf32>
    %cst_21 = arith.constant 3.200000e+01 : f32
    %46 = vector.broadcast %cst_21 : f32 to vector<8x1xf32>
    %47 = arith.divf %45, %46 : vector<8x1xf32>
    %c0_22 = arith.constant 0 : index
    %c0_23 = arith.constant 0 : index
    %48 = vector.load %arg10[%c0_22, %c0_23] : memref<1x32xf32, #tpu.memory_space<vmem>>, vector<1x32xf32>
    %cst_24 = arith.constant 9.99999996E-13 : f32
    %49 = vector.broadcast %cst_24 : f32 to vector<8x1xf32>
    %50 = arith.addf %47, %49 : vector<8x1xf32>
    %51 = math.rsqrt %50 : vector<8x1xf32>
    %52 = vector.broadcast %51 : vector<8x1xf32> to vector<8x32xf32>
    %53 = arith.mulf %42, %52 : vector<8x32xf32>
    %54 = vector.broadcast %48 : vector<1x32xf32> to vector<8x32xf32>
    %55 = arith.mulf %54, %53 : vector<8x32xf32>
    %c0_25 = arith.constant 0 : index
    %c0_26 = arith.constant 0 : index
    %56 = vector.load %arg11[%c0_25, %c0_26] : memref<1x32xf32, #tpu.memory_space<vmem>>, vector<1x32xf32>
    %57 = vector.broadcast %56 : vector<1x32xf32> to vector<8x32xf32>
    %58 = arith.addf %55, %57 : vector<8x32xf32>
    %c0_27 = arith.constant 0 : index
    %c0_28 = arith.constant 0 : index
    %c0_29 = arith.constant 0 : index
    %59 = vector.load %arg12[%c0_27, %c0_28, %c0_29] : memref<1x8x32xf32, #tpu.memory_space<vmem>>, vector<1x8x32xf32>
    %60 = vector.shape_cast %59 : vector<1x8x32xf32> to vector<8x32xf32>
    %61 = vector.shape_cast %58 : vector<8x32xf32> to vector<1x8x32xf32>
    tpu.vector_store %arg12[%c0_27, %c0_28, %c0_29], %61 {strides = array<i32>} : memref<1x8x32xf32, #tpu.memory_space<vmem>>, vector<1x8x32xf32>,
    return
  }
  func.func @transform_0(%arg0: i32, %arg1: i32) -> (i32, i32, i32) {
    %c0_i32 = arith.constant 0 : i32
    %c0_i32_0 = arith.constant 0 : i32
    %c0_i32_1 = arith.constant 0 : i32
    return %arg0, %c0_i32, %c0_i32_0 : i32, i32, i32
  }
  func.func @transform_1(%arg0: i32, %arg1: i32) -> (i32, i32, i32) {
    %c0_i32 = arith.constant 0 : i32
    %c0_i32_0 = arith.constant 0 : i32
    %c0_i32_1 = arith.constant 0 : i32
    return %arg0, %c0_i32, %c0_i32_0 : i32, i32, i32
  }
  func.func @transform_2(%arg0: i32, %arg1: i32) -> (i32, i32) {
    %c0_i32 = arith.constant 0 : i32
    %c0_i32_0 = arith.constant 0 : i32
    %c0_i32_1 = arith.constant 0 : i32
    return %c0_i32, %c0_i32_0 : i32, i32
  }
  func.func @transform_3(%arg0: i32, %arg1: i32) -> (i32, i32) {
    %c0_i32 = arith.constant 0 : i32
    %c0_i32_0 = arith.constant 0 : i32
    %c0_i32_1 = arith.constant 0 : i32
    return %c0_i32, %c0_i32_0 : i32, i32
  }
  func.func @transform_4(%arg0: i32, %arg1: i32) -> (i32, i32) {
    %c0_i32 = arith.constant 0 : i32
    %c0_i32_0 = arith.constant 0 : i32
    %c0_i32_1 = arith.constant 0 : i32
    return %c0_i32, %c0_i32_0 : i32, i32
  }
  func.func @transform_5(%arg0: i32, %arg1: i32) -> (i32, i32) {
    %c0_i32 = arith.constant 0 : i32
    %c0_i32_0 = arith.constant 0 : i32
    %c0_i32_1 = arith.constant 0 : i32
    return %c0_i32, %c0_i32_0 : i32, i32
  }
  func.func @transform_6(%arg0: i32, %arg1: i32) -> (i32, i32) {
    %c0_i32 = arith.constant 0 : i32
    %c0_i32_0 = arith.constant 0 : i32
    %c0_i32_1 = arith.constant 0 : i32
    return %c0_i32, %c0_i32_0 : i32, i32
  }
  func.func @transform_7(%arg0: i32, %arg1: i32) -> (i32, i32) {
    %c0_i32 = arith.constant 0 : i32
    %c0_i32_0 = arith.constant 0 : i32
    %c0_i32_1 = arith.constant 0 : i32
    return %c0_i32, %c0_i32_0 : i32, i32
  }
  func.func @transform_8(%arg0: i32, %arg1: i32) -> (i32, i32) {
    %c0_i32 = arith.constant 0 : i32
    %c0_i32_0 = arith.constant 0 : i32
    %c0_i32_1 = arith.constant 0 : i32
    return %c0_i32, %c0_i32_0 : i32, i32
  }
  func.func @transform_9(%arg0: i32, %arg1: i32) -> (i32, i32) {
    %c0_i32 = arith.constant 0 : i32
    %c0_i32_0 = arith.constant 0 : i32
    %c0_i32_1 = arith.constant 0 : i32
    return %c0_i32, %c0_i32_0 : i32, i32
  }
  func.func @transform_10(%arg0: i32, %arg1: i32) -> (i32, i32, i32) {
    %c0_i32 = arith.constant 0 : i32
    %c0_i32_0 = arith.constant 0 : i32
    return %arg0, %arg1, %c0_i32 : i32, i32, i32
  }
}

</mosaic_0001>

<bundles_post_ra>
// kernel: tpu_custom_call.1
= control target key start
LH: loop header
LB: loop body
LE: loop exit
PB: predicated region body
PF: predicated region fallthrough
CT: control target
= control target key end

     0   :  { %s1647_s0 = inlined_call_operand.hbm [shape: f32[2,8,32], index: 0, kind: input, shape index: {}]   ;;  %s1648_s1 = inlined_call_operand.vmem [shape: bf16[2,1,8], index: 1, kind: input, shape index: {}]   ;;  %s1649_s2 = inlined_call_operand.hbm [shape: bf16[32,32], index: 2, kind: input, shape index: {}]   ;;  %s1650_s3 = inlined_call_operand.vmem [shape: f32[1,32], index: 3, kind: input, shape index: {}]   ;;  %s1651_s4 = inlined_call_operand.hbm [shape: bf16[32,32], index: 4, kind: input, shape index: {}]   ;;  %s1652_s5 = inlined_call_operand.vmem [shape: f32[1,32], index: 5, kind: input, shape index: {}]   ;;  %s1653_s6 = inlined_call_operand.hbm [shape: bf16[32,32], index: 6, kind: input, shape index: {}]   ;;  %s1654_s7 = inlined_call_operand.vmem [shape: f32[1,32], index: 7, kind: input, shape index: {}]   ;;  %s1655_s8 = inlined_call_operand.vmem [shape: f32[1,32], index: 8, kind: input, shape index: {}]   ;;  %s1656_s9 = inlined_call_operand.vmem [shape: f32[1,32], index: 9, kind: input, shape index: {}]   ;;  %s1657_s10 = inlined_call_operand.hbm [shape: f32[2,8,32], index: 10, kind: output, shape index: {}]  }
   0x1   :  { %1665 = sst [smem:[#allocation20_spill]] %s1649_s2 }
   0x2   :  { %1666 = sst [smem:[#allocation21_spill]] %s1651_s4 }
   0x3   :  { %1667 = sst [smem:[#allocation22_spill]] %s1653_s6 }
   0x4   :  { %15 = vsyncpa [#allocation5], 0 }
   0x5   :  { %17 = vsyncpa [#allocation5 + $0x1], 0 }
   0x6   :  { %18 = vsyncpa [#allocation8], 0 }
   0x7   :  { %19 = vsyncpa [#allocation11], 0 }
   0x8   :  { %20 = vsyncpa [#allocation6], 0 }
   0x9   :  { %22 = vsyncpa [#allocation6 + $0x1], 0  ;;  %s1401_s13 = smov 0   ;;  %s1403_s14 = smov 0  }
   0xa   :  { %s1405_s15 = smov 0   ;;  %s1407_s16 = smov 0  }
   0xb   :  { %s1409_s17 = smov 0   ;;  %s1411_s18 = smov 0  }
   0xc LB: > { %1668 = sst [smem:[#allocation17_spill]] %s1315_s13  ;;  %s948_s19 = sadd.s32 4294967295, %s1335_s18   ;;  %s1335_s18 = sphi %s1411_s18, %s28_s18   ;;  %s1331_s17 = sphi %s1409_s17, %s1694_s17   ;;  %s1327_s16 = sphi %s1407_s16, %s1693_s16   ;;  %s1323_s15 = sphi %s1405_s15, %s1692_s15   ;;  %s1319_s14 = sphi %s1403_s14, %s1691_s14   ;;  %s1315_s13 = sphi %s1401_s13, %s1690_s13  }
   0xd   : > { %s949_s20 = sadd.s32 4294967294, %s1335_s18   ;;  %p60_p0 = scmp.ne.s32.totalorder %s1319_s14, %s1315_s13 }
   0xe   : > { %p1435_p1 = scmp.eq.s32.totalorder %s948_s19, 0  ;;  %p1439_p2 = scmp.eq.s32.totalorder %s948_s19, 1 }
   0xf   : > { %p286_p3 = scmp.eq.s32.totalorder %s949_s20, 1  ;;  %p950_p5 = scmp.ge.s32.totalorder %s1335_s18, 1 }
  0x10   : > { %s1669_s21 = scalar_select %p1435_p1, 1, 0 }
  0x11   : > { %p1445_p4 = por %p1435_p1, %p60_p0  ;;  %p1450_p6 = por %p286_p3, %p60_p0 }
  0x12   : > { %p293_p7 = scmp.lt.s32.totalorder %s1335_s18, 3  ;;  %s1337_s26 = smov [#allocation7]  }
  0x13   : > { %s1671_s23 = scalar_select %p1445_p4, 1, 0 }
  0x14   : > { %s1672_s24 = scalar_select %p1450_p6, 1, 0 }
  0x15   : > { %p1455_p8 = pnand %p950_p5, %p293_p7  ;;  %s305_s27 = sshll.u32 %s1337_s26, 4  ;;  %s306_s27 = int_to_ptr.vmem [resolvable:$true] %s305_s27 }
  0x16   : > { %1673 = sst [smem:[#allocation18_spill]] %s1672_s24  ;;  %s1338_s29 = smov [#allocation9]  }
  0x17   : > { %s1674_s25 = scalar_select %p1455_p8, 1, 0 }
  0x18   : > { %p1048_p9 = pneg %p1455_p8  ;;  %s321_s30 = sshll.u32 %s1338_s29, 4  ;;  %s322_s30 = int_to_ptr.vmem [resolvable:$true] %s321_s30 }
  0x19   : > { %s1339_s11 = smov [#allocation10]   ;;  %s1152_s19 = scalar_lea.vmem %s306_s27, 256 }
  0x1a   : > { %p1464_p11 = pnand %p1048_p9, %p1435_p1  ;;  %s337_s12 = sshll.u32 %s1339_s11, 4  ;;  %s338_s12 = int_to_ptr.vmem [resolvable:$true] %s337_s12 }
  0x1b   : > { %p1153_p13 = scmp.ne.s32.totalorder %s306_s27, %s1152_s19  ;;  %p1160_p5 = scmp.lt.s32.totalorder %s306_s27, %s306_s27 }
  0x1c   : > { %p1143_p12 = pneg %p1464_p11  ;;  %p1161_p7 = scmp.lt.s32.totalorder %s1152_s19, %s1152_s19 }
  0x1e   : > { %p1155_p0 = pnand %p1153_p13, %p1143_p12  ;;  %p1162_p9 = por %p1161_p7, %p1160_p5 }
  0x20   : > { %p1156_p3 = pneg %p1155_p0 }
  0x22   : > { %p1163_p10 = pnand %p1162_p9, %p1156_p3 }
  0x24   : > { %1166 = shalt.err (!%p1163_p10)
}
  0x25   : > { %s1340_s20 = smov 64   ;;  %s1341_s26 = smov 4  }
  0x26   : > { %s1676_s2 = sld [smem:[#allocation20_spill]]  ;;  %s1178_s24 = scalar_lea.vmem %s322_s30, 256 }
  0x27   : > { %p1179_p6 = scmp.ne.s32.totalorder %s322_s30, %s1178_s24  ;;  %p1186_p1 = scmp.lt.s32.totalorder %s322_s30, %s322_s30 }
  0x28   : > { %p1187_p4 = scmp.lt.s32.totalorder %s1178_s24, %s1178_s24 }
  0x29   : > { %p1181_p13 = pnand %p1179_p6, %p1143_p12 }
  0x2a   : > { %p1188_p5 = por %p1187_p4, %p1186_p1 }
  0x2b   : > { %p1182_p0 = pneg %p1181_p13 }
  0x2c   : > { %1051 = dma.hbm_to_vmem [thread:$0]  (!%p1464_p11), %s1676_s2, 256, %s306_s27, [#allocation8], %s1340_s20, %s1340_s20, %s1341_s26  }
  0x2d   : > { %p1189_p3 = pnand %p1188_p5, %p1182_p0 }
  0x2f   : > { %1192 = shalt.err (!%p1189_p3)
}
  0x30   : > { %s1677_s4 = sld [smem:[#allocation21_spill]]  ;;  %s1204_s27 = scalar_lea.vmem %s338_s12, 256 }
  0x31   : > { %p1205_p10 = scmp.ne.s32.totalorder %s338_s12, %s1204_s27  ;;  %p1212_p9 = scmp.lt.s32.totalorder %s338_s12, %s338_s12 }
  0x32   : > { %p1213_p13 = scmp.lt.s32.totalorder %s1204_s27, %s1204_s27 }
  0x33   : > { %p1207_p7 = pnand %p1205_p10, %p1143_p12 }
  0x34   : > { %p1214_p8 = por %p1213_p13, %p1212_p9 }
  0x35   : > { %p1208_p6 = pneg %p1207_p7 }
  0x36   : > { %1054 = dma.hbm_to_vmem [thread:$0]  (!%p1464_p11), %s1677_s4, 256, %s322_s30, [#allocation8], %s1340_s20, %s1340_s20, %s1341_s26  }
  0x37   : > { %p1215_p1 = pnand %p1214_p8, %p1208_p6 }
  0x39   : > { %1218 = shalt.err (!%p1215_p1)
}
  0x3a   : > { %s1678_s6 = sld [smem:[#allocation22_spill]]  ;;  %s47_s13 = sadd.s32 1, %s1323_s15 }
  0x3b   : > { %s40_s30 = sadd.s32 1, %s1331_s17  ;;  %p54_p4 = scmp.ne.s32.totalorder %s1323_s15, %s1319_s14 }
  0x3c   : > { %p42_p8 = scmp.ge.s32.totalorder %s40_s30, 2  ;;  %p55_p12 = scmp.eq.s32.totalorder %s1335_s18, 0 }
  0x3d   : > { %p1501_p0 = por %p1439_p2, %p54_p4  ;;  %p1069_p5 = scmp.lt.s32.totalorder %s1335_s18, 2 }
  0x3e   : > { %s1696_s30 = smov (%p42_p8, %s40_s30), 0  ;;  %p56_p3 = por %p55_p12, %p54_p4 }
  0x3f   : > { %1680 = sst [smem:[#allocation19_spill]] %s1696_s30  ;;  %s360_s11 = sand.u32 1, %s1323_s15  }
  0x40   : > { %1057 = dma.hbm_to_vmem [thread:$0]  (!%p1464_p11), %s1678_s6, 256, %s338_s12, [#allocation11], %s1340_s20, %s1340_s20, %s1341_s26  }
  0x41   : > { %s44_s19 = ssub.s32 %s1331_s17, %s1696_s30  ;;  %s955_s12 = sshll.u32 %s360_s11, 3 }
  0x42   : > { %p45_p10 = scmp.eq.s32.totalorder %s44_s19, 0  ;;  %s956_s20 = sshll.u32 %s1331_s17, 7 }
  0x43   : > { %s369_s22 = scalar_lea.hbm %s1647_s0, %s956_s20  ;;  %s364_s29 = scalar_lea.vmem [#allocation4], %s955_s12 }
  0x44   : > { %s1513_s26 = scalar_select %p45_p10, %s1323_s15, %s47_s13  }
  0x45   : > { %s371_s2 = sshll.u32 %s364_s29, 4  ;;  %p1520_p2 = pnand %p1069_p5, %p56_p3  ;;  %s372_s2 = int_to_ptr.vmem [resolvable:$true] %s371_s2 }
  0x46   : > { %s361_s6 = scalar_lea.sflag [#allocation5], %s360_s11  ;;  %s1232_s19 = scalar_lea.vmem %s372_s2, 128 }
  0x47   : > { %p1221_p11 = pneg %p1520_p2  ;;  %p1233_p7 = scmp.ne.s32.totalorder %s372_s2, %s1232_s19 }
  0x48   : > { %s1342_s13 = smov [#allocation4]  }
  0x49   : > { %p1235_p6 = pnand %p1233_p7, %p1221_p11  ;;  %s1237_s30 = sshll.u32 %s1342_s13, 4  ;;  %s1238_s30 = int_to_ptr.vmem [resolvable:$false] %s1237_s30 }
  0x4a   : > { %s1239_s20 = scalar_lea.vmem %s1238_s30, 256  ;;  %p1240_p13 = scmp.lt.s32.totalorder %s372_s2, %s1238_s30 }
  0x4b   : > { %p1236_p9 = pneg %p1235_p6  ;;  %p1241_p1 = scmp.lt.s32.totalorder %s1239_s20, %s1232_s19 }
  0x4d   : > { %p1242_p4 = por %p1241_p1, %p1240_p13 }
  0x4f   : > { %p1243_p8 = pnand %p1242_p4, %p1236_p9 }
  0x51   : > { %1246 = shalt.err (!%p1243_p8)
}
  0x52   : > { %1061 = dma.hbm_to_vmem [thread:$0]  (!%p1520_p2), %s369_s22, 128, %s372_s2, %s361_s6  }
  0x53   : > { %p1682_p12 = scmp.ne.s32.totalorder %s1674_s25, 0 }
  0x54   : > { %s1531_s11 = sand.u32 (!%p1682_p12), 1, %s1319_s14   ;;  %p1683_p5 = scmp.ne.s32.totalorder (!%p1682_p12), %s1671_s23, 0 }
  0x55   : > { %386 = sbr.rel (%p1682_p12) target bundleno = 1543 (0x607), region = 60  ;;  %s958_s12 = sshll.u32 (!%p1682_p12), %s1531_s11, 3 }
  0x56   : > { %s389_s27 = scalar_lea.sflag (!%p1682_p12), [#allocation5], %s1531_s11  ;;  %s392_s30 = scalar_lea.vmem (!%p1682_p12), [#allocation4], %s958_s12 }
  0x5a   : > { %1298 = dma.done.wait (%p1683_p5), %s389_s27, 128  }
  0x5b   : > { %1300 = vsyncadd (%p1683_p5), %s389_s27, 4294967168  ;;  %p1684_p3 = scmp.ne.s32.totalorder %s1669_s21, 0 }
  0x5d   : > { %1302 = dma.done.wait (%p1684_p3), [#allocation8], 512  }
  0x5e   : > { %1304 = vsyncadd (%p1684_p3), [#allocation8], 4294966784 }
  0x5f   : > { %1306 = dma.done.wait (%p1684_p3), [#allocation11], 256  }
  0x60   : > { %1308 = vsyncadd (%p1684_p3), [#allocation11], 4294967040  ;;  %v1343_v0 = vmov 0.0   ;;  %vm1344_vm0 = vmmov 0   ;;  %v1129_v1 = vld [vmem:[#allocation7 + $0x8] sm:$0xff]   ;;  %v1130_v2 = vld [vmem:[#allocation7] sm:$0xff]   ;;  %v599_v18 = vlaneseq }
  0x61   : > { %996 = vmatprep.subr.bf16.mxu0 %v1343_v0  ;;  %1000 = vmatprep.mubr.msk.bf16.mxu0 %vm1344_vm0, %v1343_v0  ;;  %v1555_v3 = vld [vmem:[%s392_s30] sm:$0xff]  ;;  %vm477_vm1 = vcmask 261120   ;;  %v963_v5 = vld [vmem:[%s1650_s3] ss:$0 sm:$0xff]  ;;  %vm586_vm2 = vcmask 257024   ;;  %p444_p10 = scmp.lt.s32.totalorder %s1327_s16, 1 }
  0x62   : > { %1004 = vmatprep.subr.bf16.mxu1 %v1343_v0  ;;  %1008 = vmatprep.mubr.msk.bf16.mxu1 %vm1344_vm0, %v1343_v0  ;;  %v453_v4 = vpack.c.bf16 %v1555_v3, %v1555_v3  ;;  %v1131_v16 = vld [vmem:[#allocation9 + $0x8] sm:$0xff]   ;;  %v1132_v17 = vld [vmem:[#allocation9] sm:$0xff]   ;;  %v600_v19 = vshrl.u32 %v599_v18, 7  ;;  %vm650_vm3 = vcmask 64512   ;;  %v967_v30 = vld [vmem:[%s1652_s5] ss:$0 sm:$0xff] }
  0x63   : > { %997 = vmatpush3.bf16.msra.mxu0 %v1129_v1  ;;  %1005 = vmatpush3.bf16.msra.mxu1 %v1131_v16  ;;  %s445_s6 = scalar_select %p444_p10, %s1327_s16, 1  ;;  %vm667_vm4 = vcmask 1043456   ;;  %v1133_v44 = vld [vmem:[#allocation10 + $0x8] sm:$0xff]   ;;  %v1134_v49 = vld [vmem:[#allocation10] sm:$0xff]  }
  0x64   : > { %998 = vmatprep.subr.bf16.mxu0 %v1343_v0  ;;  %1006 = vmatprep.subr.bf16.mxu1 %v1343_v0  ;;  %v601_v22 = vsub.s32 0, %v600_v19  ;;  %v973_v55 = vld [vmem:[%s1654_s7] ss:$0 sm:$0xff]  ;;  %s980_s2 = sshll.u32 %s1327_s16, 7  ;;  %s443_s4 = scalar_lea.vmem [#allocation12], %s958_s12 }
  0x65   : > { %s446_s25 = scalar_lea.vmem %s1648_s1, %s445_s6  ;;  %s827_s6 = sshll.u32 %s443_s4, 4  ;;  %s828_s6 = int_to_ptr.vmem [resolvable:$true] %s827_s6 }
  0x66   : > { %v597_v20 = vld [vmem:[%s446_s25] sm:$0x1]  ;;  %s825_s25 = scalar_lea.hbm %s1657_s10, %s980_s2  ;;  %s813_s24 = scalar_lea.sflag [#allocation6], %s1531_s11 }
  0x67   : > { %999 = vmatpush3.bf16.msra.mxu0 %v1130_v2  ;;  %1007 = vmatpush3.bf16.msra.mxu1 %v1132_v17  ;;  %v598_v21 = vunpack.c.l.bf16 %v597_v20  ;;  %s1247_s22 = scalar_lea.vmem %s828_s6, 128  ;;  %s1345_s29 = smov [#allocation12]  }
  0x68   : > { %1012 = vmatprep.subr.bf16.mxu0 %v1343_v0  ;;  %1018 = vmatprep.subr.bf16.mxu1 %v1343_v0  ;;  %p1248_p2 = scmp.ne.s32.totalorder %s828_s6, %s1247_s22  ;;  %s1251_s16 = sshll.u32 %s1345_s29, 4  ;;  %s1252_s16 = int_to_ptr.vmem [resolvable:$false] %s1251_s16 }
  0x69   : > { %v602_v23 = vrot.slane %v598_v21, %v601_v22  ;;  %s1253_s12 = scalar_lea.vmem %s1252_s16, 256  ;;  %p1254_p6 = scmp.lt.s32.totalorder %s828_s6, %s1252_s16 }
  0x6a   : > { %1001 = vmatmul.mubr.msk.bf16.vlgmr.msra.gmra.mxu0 %vm477_vm1, %v453_v4  ;;  %1009 = vmatmul.mubr.msk.bf16.vlgmr.msra.gmra.mxu1 %vm477_vm1, %v453_v4  ;;  %p1249_p11 = pnand %p1248_p2, %p1501_p0  ;;  %p1255_p9 = scmp.lt.s32.totalorder %s1253_s12, %s1247_s22 }
  0x6b   : > { %1014 = vmatprep.mubr.msk.bf16.mxu0 %vm1344_vm0, %v1343_v0  ;;  %1020 = vmatprep.mubr.msk.bf16.mxu1 %vm1344_vm0, %v1343_v0 }
  0x6c   : > { %p1250_p7 = pneg %p1249_p11  ;;  %p1256_p13 = por %p1255_p9, %p1254_p6 }
  0x6e   : > { %p1257_p1 = pnand %p1256_p13, %p1250_p7 }
 0x12a   : > { %v515_v6 = vpop.f32.mrf.mxu0  ;;  %v578_v31 = vpop.f32.mrf.mxu1 }
 0x12b   : > { %v516_v7 = vadd.f32 %v963_v5, %v515_v6  ;;  %v579_v32 = vadd.f32 %v967_v30, %v578_v31 }
 0x12c   : > { %v1002_v8 = vpop.f32.mrf.mxu0  ;;  %v1010_v33 = vpop.f32.mrf.mxu1 }
 0x12d   : > { %v584_v9 = vmul.f32 0.4204482, %v516_v7  ;;  %v588_v34 = vpack.c.bf16 %v579_v32, %v579_v32  ;;  %v977_v8 = vld [vmem:[%s1655_s8] ss:$0 sm:$0xff] }
 0x12e   : > { %v518_v10 = vpop.f32.mrf.mxu0  ;;  %v581_v35 = vpop.f32.mrf.mxu1 }
 0x12f   : > { %v585_v11 = vpack.c.bf16 %v584_v9, %v584_v9  ;;  %589 = vst.msk [vmem:[#allocation3] sm:$0xf] %vm586_vm2, %v588_v34  ;;  %v978_v10 = vld [vmem:[%s1656_s9] ss:$0 sm:$0xff] }
 0x130   : > { %v1003_v12 = vpop.f32.mrf.mxu0  ;;  %v1011_v36 = vpop.f32.mrf.mxu1 }
 0x131   : > { %587 = vst.msk [vmem:[#allocation2] sm:$0xf] %vm586_vm2, %v585_v11 }
 0x136   : > { %v663_v42 = vld [vmem:[#allocation3] sm:$0xf] }
 0x137   : > { %v669_v43 = vsel %vm667_vm4, %v663_v42, 0 }
 0x138   : > { %v596_v13 = vld [vmem:[#allocation2] sm:$0xf]  ;;  %1019 = vmatpush3.bf16.msra.mxu1 %v669_v43 }
 0x139   : > { %v608_v14 = vsel %vm477_vm1, %v596_v13, 0  ;;  %v595_v15 = vld [vmem:[#allocation2] sm:$0xf] }
 0x13a   : > { %1013 = vmatpush3.bf16.xpose.msra.mxu0 %v608_v14 }
 0x13b   : > { %1024 = vmatprep.subr.bf16.mxu0 %v1343_v0 }
 0x141   : > { %1015 = vmatmul.mubr.msk.bf16.vlgmr.msra.gmra.mxu0 %vm477_vm1, %v595_v15 }
 0x142   : > { %1028 = vmatprep.mubr.msk.bf16.mxu0 %vm1344_vm0, %v1343_v0  ;;  %1025 = vmatpush3.bf16.msra.mxu0 %v1133_v44 }
 0x143   : > { %1026 = vmatprep.subr.bf16.mxu0 %v1343_v0 }
 0x146   : > { %1027 = vmatpush3.bf16.msra.mxu0 %v1134_v49 }
 0x201   : > { %v644_v24 = vpop.f32.mrf.mxu0 }
 0x202   : > { %v645_v25 = vadd.f32 %v644_v24, %v602_v23 }
 0x203   : > { %v1016_v26 = vpop.f32.mrf.mxu0 }
 0x204   : > { %v651_v27 = vsel %vm650_vm3, %v645_v25, -inf }
 0x205   : > { %652 = vmax.xlane.f32.xlu0 %v651_v27  ;;  %v647_v28 = vpop.f32.mrf.mxu0 }
 0x207   : > { %v1017_v29 = vpop.f32.mrf.mxu0 }
 0x28e   : > { %v653_v37 = vpop.xlane.xlu0 %652 }
 0x28f   : > { %v654_v38 = vsub.f32 %v645_v25, %v653_v37 }
 0x291   : > { %v655_v39 = vmul.f32 1.442695, %v654_v38 }
 0x293   : > { %1135 = vpow2.f32 %v655_v39 }
 0x2a0   : > { %v1136_v40 = vpop.eup %1135 }
 0x2a1   : > { %v657_v41 = vsel %vm650_vm3, %v1136_v40, 0.0 }
 0x2a2   : > { %658 = vadd.xlane.f32.xlu0 %v657_v41 }
 0x32b   : > { %v659_v45 = vpop.xlane.xlu0 %658 }
 0x32c   : > { %1137 = vrcp.f32 %v659_v45 }
 0x339   : > { %v1138_v46 = vpop.eup %1137 }
 0x33a   : > { %v661_v47 = vmul.f32 %v1138_v46, %v1136_v40 }
 0x33c   : > { %v662_v48 = vpack.c.bf16 %v661_v47, %v661_v47 }
 0x33e   : > { %1021 = vmatmul.mubr.msk.bf16.vlgmr.msra.gmra.mxu1 %vm650_vm3, %v662_v48 }
 0x3fe   : > { %v705_v50 = vpop.f32.mrf.mxu1 }
 0x3ff   : > { %v711_v51 = vpack.c.bf16 %v705_v50, %v705_v50 }
 0x400   : > { %v1022_v52 = vpop.f32.mrf.mxu1 }
 0x401   : > { %1029 = vmatmul.mubr.msk.bf16.vlgmr.msra.gmra.mxu0 %vm477_vm1, %v711_v51 }
 0x402   : > { %v708_v53 = vpop.f32.mrf.mxu1 }
 0x404   : > { %v1023_v54 = vpop.f32.mrf.mxu1 }
 0x4c1   : > { %v772_v56 = vpop.f32.mrf.mxu0 }
 0x4c2   : > { %v773_v57 = vadd.f32 %v973_v55, %v772_v56 }
 0x4c3   : > { %v1030_v58 = vpop.f32.mrf.mxu0 }
 0x4c4   : > { %v780_v59 = vadd.f32 %v773_v57, %v1555_v3 }
 0x4c5   : > { %v775_v60 = vpop.f32.mrf.mxu0 }
 0x4c6   : > { %v781_v61 = vsel %vm477_vm1, %v780_v59, 0.0 }
 0x4c7   : > { %782 = vadd.xlane.f32.xlu1 %v781_v61  ;;  %v1031_v62 = vpop.f32.mrf.mxu0 }
 0x550   : > { %v783_v63 = vpop.xlane.xlu1 %782 }
 0x551   : > { %v785_v0 = vmul.f32 0.03125, %v783_v63 }
 0x553   : > { %v786_v1 = vsub.f32 %v780_v59, %v785_v0 }
 0x555   : > { %v787_v2 = vmul.f32 %v786_v1, %v786_v1 }
 0x557   : > { %v788_v4 = vsel %vm477_vm1, %v787_v2, 0.0 }
 0x558   : > { %789 = vadd.xlane.f32.xlu1 %v788_v4 }
 0x5e1   : > { %v790_v5 = vpop.xlane.xlu1 %789 }
 0x5e2   : > { %v791_v6 = vmul.f32 0.03125, %v790_v5 }
 0x5e4   : > { %v793_v7 = vadd.f32 1e-12, %v791_v6 }
 0x5e6   : > { %1139 = vrsqrt.f32 %v793_v7 }
 0x5f3   : > { %v1140_v3 = vpop.eup %1139 }
 0x5f4   : > { %v795_v9 = vmul.f32 %v1140_v3, %v786_v1 }
 0x5f6   : > { %v802_v11 = vmul.f32 %v977_v8, %v795_v9 }
 0x5f8   : > { %v810_v12 = vadd.f32 %v978_v10, %v802_v11 }
 0x5fa   : > { %811 = vst.msk [vmem:[%s443_s4] sm:$0xff] %vm477_vm1, %v810_v12 }
 0x5fb   : > { %1260 = shalt.err (!%p1257_p1)
}
 0x5fc   : > { %s1261_s19 = scalar_lea.hbm %s825_s25, 128  ;;  %s1265_s20 = scalar_lea.hbm %s1657_s10, 256 }
 0x5fd   : > { %p1262_p4 = scmp.ne.s32.totalorder %s825_s25, %s1261_s19  ;;  %p1266_p5 = scmp.lt.s32.totalorder %s825_s25, %s1657_s10 }
 0x5fe   : > { %p1267_p3 = scmp.lt.s32.totalorder %s1265_s20, %s1261_s19 }
 0x5ff   : > { %p1263_p8 = pnand %p1262_p4, %p1501_p0 }
 0x600   : > { %p1268_p10 = por %p1267_p3, %p1266_p5 }
 0x601   : > { %p1264_p12 = pneg %p1263_p8 }
 0x603   : > { %p1269_p2 = pnand %p1268_p10, %p1264_p12 }
 0x605   : > { %1272 = shalt.err (!%p1269_p2)
}
 0x606   : > { %1046 = dma.vmem_to_hbm [thread:$0]  (%p1501_p0), %s828_s6, 128, %s825_s25, %s813_s24  }
 0x607 PF: > { %s1685_s2 = sld [smem:[#allocation17_spill]]  ;;  %p1688_p7 = scmp.ge.s32.totalorder %s1335_s18, 2 }
 0x608   : > { %s1686_s4 = sld [smem:[#allocation18_spill]] }
 0x60d   : > { %s839_s21 = sand.u32 1, %s1685_s2  }
 0x60e   : > { %p1687_p11 = scmp.ne.s32.totalorder %s1686_s4, 0  ;;  %s840_s23 = scalar_lea.sflag [#allocation6], %s839_s21 }
 0x610   : > { %p1063_p6 = pnand %p1688_p7, %p1687_p11 }
 0x612   : > { %p1064_p9 = pneg %p1063_p6 }
 0x614   : > { %1310 = dma.done.wait (%p1064_p9), %s840_s23, 128  }
 0x615   : > { %1312 = vsyncadd (%p1064_p9), %s840_s23, 4294967168  ;;  %s28_s18 = sadd.s32 1, %s1335_s18   ;;  %s1689_s28 = sld [smem:[#allocation19_spill]] }
 0x616   : > { %p25_p13 = scmp.ge.s32.totalorder %s28_s18, 4   ;;  %s1690_s13 = smov %s1319_s14 }
 0x617   : > { %s1691_s14 = smov %s1323_s15  ;;  %s1692_s15 = smov %s1513_s26 }
 0x618   : > { %s1693_s16 = smov %s1331_s17  ;;  %27 = sbr.rel (!%p25_p13) target bundleno = 12 (0xc), region = 126 }
 0x61b   : > { %s1694_s17 = smov %s1689_s28 }
 0x61d   :  { %845 = vsyncpa [#allocation5], 1 }
 0x61e   :  { %847 = vsyncpa [#allocation5 + $0x1], 1 }
 0x61f   :  { %848 = vsyncpa [#allocation8], 1 }
 0x620   :  { %849 = vsyncpa [#allocation11], 1 }
 0x621   :  { %850 = vsyncpa [#allocation6], 1 }
 0x622   :  { %852 = vsyncpa [#allocation6 + $0x1], 1 }

</bundles_post_ra>
